<compile_context>
chip_gen: v6e
topology: v6e:2x2x1
jax: 0.10.0
libtpu: 0.0.40
codegen_flags: <defaults>
</compile_context>

<pallas_src>
import functools

import jax
import jax.numpy as jnp
from jax.experimental import pallas as pl
from jax.experimental.pallas import tpu as pltpu


def _round_up(x, m):
    return ((x + m - 1) // m) * m


def _embed_kernel(ids_ref, table_ref, out_ref, *,
                  dropout_rate, train, seed, tile, dim, vocab_padded):
    """One grid step == one tile of `tile` tokens."""
    ids = ids_ref[...]                                            # (tile, 1) int32

    # Gather via one-hot matmul on the MXU: (tile, Vp) @ (Vp, dim).
    col = jax.lax.broadcasted_iota(jnp.int32, (tile, vocab_padded), 1)
    onehot = (col == ids).astype(table_ref.dtype)                 # (tile, Vp)
    rows = jnp.dot(onehot, table_ref[...],
                   preferred_element_type=jnp.float32)            # (tile, dim) f32

    if train and 0.0 < dropout_rate < 1.0:
        # Stateless per-element hash -> integer-threshold keep mask.
        base = pl.program_id(0) * tile
        r = jax.lax.broadcasted_iota(jnp.int32, (tile, dim), 0) + base
        c = jax.lax.broadcasted_iota(jnp.int32, (tile, dim), 1)
        x = r * jnp.int32(dim) + c
        # murmur-style finalizer; int32 wraparound multiplies, logical shifts
        # emulated with arithmetic shift + mask.
        x = x ^ jnp.int32(seed & 0x7FFFFFFF)
        x = x * jnp.int32(-1640531535)                 # 0x9E3779B1
        x = x ^ ((x >> 16) & jnp.int32(0xFFFF))
        x = x * jnp.int32(2145916205)                  # 0x7FEB352D
        x = x ^ ((x >> 15) & jnp.int32(0x1FFFF))
        x = x * jnp.int32(-2073317749)                 # 0x846CA68B
        x = x ^ ((x >> 16) & jnp.int32(0xFFFF))
        bits31 = x & jnp.int32(0x7FFFFFFF)             # uniform in [0, 2^31)
        thr = min(int(round(dropout_rate * (1 << 31))), (1 << 31) - 1)
        keep = bits31 >= jnp.int32(thr)
        scale = jnp.float32(1.0 / (1.0 - dropout_rate))
        rows = jnp.where(keep, rows * scale, jnp.float32(0.0))

    out_ref[...] = rows.astype(out_ref.dtype)


def embedding_layer_forward(indices, table, *, dropout_rate=0.0, train=False,
                            seed=0, max_tile=512):
    """
    :param indices: int array, either [seq] (non-batched) or [batch, seq]
    :param table:   float embedding table [vocab, input_dim] (nn.Embedding weight)
    :param dropout_rate: dropout probability (torch nn.Dropout semantics)
    :param train:   if False, dropout is the identity (torch eval mode)
    :return: embeddings with shape indices.shape + (input_dim,)
    """
    orig_shape = indices.shape
    flat = indices.reshape(-1).astype(jnp.int32)
    n_tokens = int(flat.shape[0])
    vocab, dim = table.shape
    out_dtype = table.dtype

    if train and dropout_rate >= 1.0:
        # torch.nn.Dropout(p=1.0) zeroes everything.
        return jnp.zeros(orig_shape + (dim,), dtype=out_dtype)

    # --- token tiling: big, (8,128)-friendly output blocks -------------------
    tile = min(int(max_tile), _round_up(n_tokens, 8))
    padded_n = _round_up(n_tokens, tile)
    ids = jnp.pad(flat, (0, padded_n - n_tokens)).reshape(padded_n, 1)

    # --- keep the (small) table VMEM-resident; pad rows to a 128 multiple ----
    vocab_padded = _round_up(vocab, 128)
    table_p = jnp.pad(table, ((0, vocab_padded - vocab), (0, 0)))

    kernel = functools.partial(
        _embed_kernel,
        dropout_rate=float(dropout_rate), train=bool(train), seed=int(seed),
        tile=tile, dim=int(dim), vocab_padded=int(vocab_padded))

    out = pl.pallas_call(
        kernel,
        out_shape=jax.ShapeDtypeStruct((padded_n, dim), out_dtype),
        grid=(padded_n // tile,),
        in_specs=[
            pl.BlockSpec((tile, 1), lambda i: (i, 0)),             # token ids
            pl.BlockSpec((vocab_padded, dim), lambda i: (0, 0)),   # resident table
        ],
        out_specs=pl.BlockSpec((tile, dim), lambda i: (i, 0)),
        compiler_params=pltpu.CompilerParams(
            dimension_semantics=("parallel",)),
    )(ids, table_p)

    return out[:n_tokens].reshape(*orig_shape, dim)


if __name__ == "__main__":
    # Small, deterministic setup consistent with the module's __init__.
    input_dim = 128          # dimensionality of the word vectors
    full_dict_size = 50      # vocabulary size
    dropout_rate = 0.1
    batch, seq = 2, 8

    key = jax.random.PRNGKey(0)
    k_table, k_ids = jax.random.split(key)

    word_embedding = jax.random.normal(
        k_table, (full_dict_size, input_dim), dtype=jnp.float32)
    indices = jax.random.randint(
        k_ids, (batch, seq), minval=0, maxval=full_dict_size, dtype=jnp.int32)

    # Eval-mode forward (dropout == identity) — check against pure-JAX gather.
    out_eval = embedding_layer_forward(
        indices, word_embedding, dropout_rate=dropout_rate, train=False)
    out_eval = jax.block_until_ready(out_eval)
    ref_eval = jnp.take(word_embedding, indices, axis=0)
    assert out_eval.shape == (batch, seq, input_dim)
    assert jnp.allclose(out_eval, ref_eval, atol=1e-5), "embedding gather mismatch"

    # Training-mode forward (in-kernel inverted dropout).
    out_train = embedding_layer_forward(
        indices, word_embedding, dropout_rate=dropout_rate, train=True, seed=42)
    out_train = jax.block_until_ready(out_train)
    assert out_train.shape == (batch, seq, input_dim)
    scaled = ref_eval / (1.0 - dropout_rate)
    ok = jnp.logical_or(jnp.isclose(out_train, 0.0, atol=1e-6),
                        jnp.isclose(out_train, scaled, rtol=1e-4, atol=1e-5))
    assert bool(jnp.all(ok)), "dropout semantics mismatch"

    # Non-batched input path ([sent_len] indices), as the module supports.
    out_1d = embedding_layer_forward(
        indices[0], word_embedding, dropout_rate=dropout_rate, train=False)
    out_1d = jax.block_until_ready(out_1d)
    assert out_1d.shape == (seq, input_dim)
    assert jnp.allclose(out_1d, ref_eval[0], atol=1e-5)

    print("KERNEL_OK")
</pallas_src>

<mosaic_0001>
module attributes {stable_mosaic.version = 11 : i64} {
  func.func @_embed_kernel(%arg0: i32, %arg1: memref<16x1xi32, #tpu.memory_space<vmem>>, %arg2: memref<128x128xf32, #tpu.memory_space<vmem>>, %arg3: memref<16x128xf32, #tpu.memory_space<vmem>>) attributes {dimension_semantics = [#tpu.dimension_semantics<parallel>], iteration_bounds = array<i64: 1>, scalar_prefetch = 0 : i64, scratch_operands = 0 : i64, tpu.core_type = #tpu.core_type<tc>, window_params = [{transform_indices = @transform_0, window_bounds = array<i64: 16, 1>}, {pipeline_mode = #tpu.pipeline_mode<synchronous>, transform_indices = @transform_1, window_bounds = array<i64: 128, 128>}, {transform_indices = @transform_2, window_bounds = array<i64: 16, 128>}]} {
    %c0 = arith.constant 0 : index
    %c0_0 = arith.constant 0 : index
    %0 = vector.load %arg1[%c0, %c0_0] : memref<16x1xi32, #tpu.memory_space<vmem>>, vector<16x1xi32>
    %1 = tpu.iota {dimensions = array<i32: 1>} : vector<16x128xi32>
    %2 = vector.broadcast %0 : vector<16x1xi32> to vector<16x128xi32>
    %3 = arith.cmpi eq, %1, %2 : vector<16x128xi32>
    %4 = arith.extui %3 : vector<16x128xi1> to vector<16x128xi32>
    %5 = arith.sitofp %4 : vector<16x128xi32> to vector<16x128xf32>
    %c0_1 = arith.constant 0 : index
    %c0_2 = arith.constant 0 : index
    %6 = vector.load %arg2[%c0_1, %c0_2] : memref<128x128xf32, #tpu.memory_space<vmem>>, vector<128x128xf32>
    %cst = arith.constant dense<0.000000e+00> : vector<16x128xf32>
    %7 = tpu.matmul %5, %6, %cst {dimension_numbers = #tpu.dot_dimension_numbers<[1], [0], [0], [1], [0, 0, 1, 1], [], []>} : vector<16x128xf32>, vector<128x128xf32>, vector<16x128xf32> -> vector<16x128xf32>
    %c0_3 = arith.constant 0 : index
    %c0_4 = arith.constant 0 : index
    %8 = vector.load %arg3[%c0_3, %c0_4] : memref<16x128xf32, #tpu.memory_space<vmem>>, vector<16x128xf32>
    tpu.vector_store %arg3[%c0_3, %c0_4], %7 {strides = array<i32>} : memref<16x128xf32, #tpu.memory_space<vmem>>, vector<16x128xf32>,
    return
  }
  func.func @transform_0(%arg0: i32) -> (i32, i32) {
    %c0_i32 = arith.constant 0 : i32
    %c0_i32_0 = arith.constant 0 : i32
    return %arg0, %c0_i32 : i32, i32
  }
  func.func @transform_1(%arg0: i32) -> (i32, i32) {
    %c0_i32 = arith.constant 0 : i32
    %c0_i32_0 = arith.constant 0 : i32
    %c0_i32_1 = arith.constant 0 : i32
    return %c0_i32, %c0_i32_0 : i32, i32
  }
  func.func @transform_2(%arg0: i32) -> (i32, i32) {
    %c0_i32 = arith.constant 0 : i32
    %c0_i32_0 = arith.constant 0 : i32
    return %arg0, %c0_i32 : i32, i32
  }
}

</mosaic_0001>

<bundles_post_ra>
// kernel: tpu_custom_call.1
= control target key start
LH: loop header
LB: loop body
LE: loop exit
PB: predicated region body
PF: predicated region fallthrough
CT: control target
= control target key end

     0   :  { %7 = vsyncpa [#allocation3], 0  ;;  %s299_s0 = inlined_call_operand.vmem [shape: s32[16,1], index: 0, kind: input, shape index: {}]   ;;  %s300_s1 = inlined_call_operand.hbm [shape: f32[128,128], index: 1, kind: input, shape index: {}]   ;;  %s301_s2 = inlined_call_operand.hbm [shape: f32[16,128], index: 2, kind: output, shape index: {}]  }
   0x1   :  { %8 = vsyncpa [#allocation4], 0  ;;  %s260_s9 = smov [#allocation2]  }
   0x2   :  { %s16_s10 = sshll.u32 %s260_s9, 4  ;;  %s17_s10 = int_to_ptr.vmem [resolvable:$true] %s16_s10 }
   0x3   :  { %s224_s11 = scalar_lea.vmem %s17_s10, 2048  ;;  %p229_p1 = scmp.lt.s32.totalorder %s17_s10, %s17_s10 }
   0x4   :  { %p225_p0 = scmp.ne.s32.totalorder %s17_s10, %s224_s11  ;;  %p230_p2 = scmp.lt.s32.totalorder %s224_s11, %s224_s11 }
   0x6   :  { %p231_p3 = por %p230_p2, %p229_p1 }
   0x8   :  { %p232_p4 = pnand %p231_p3, %p225_p0 }
   0xa   :  { %235 = shalt.err (!%p232_p4)
}
   0xb   :  { %s261_s12 = smov 128   ;;  %s262_s13 = smov 8  }
   0xc   :  { %22 = dma.hbm_to_vmem [thread:$0]  %s300_s1, 2048, %s17_s10, [#allocation3], %s261_s12, %s261_s12, %s262_s13  }
   0xd   :  { %256 = dma.done.wait [#allocation3], 2048  }
   0xe   :  { %257 = vsyncadd [#allocation3], 4294965248  ;;  %v263_v0 = vmov 0   ;;  %v26_v1 = vld [vmem:[%s299_s0] sm:$0xff]  ;;  %v57_v2 = vld [vmem:[#allocation2 + $0x78] sm:$0xff]  ;;  %v28_v19 = vlaneseq  ;;  %v264_v22 = vmov 1.0  }
   0xf   :  { %215 = vset.pattern.permute.xlu0 %v263_v0  ;;  %174 = vmatprep.subr.mxu0 %v57_v2  ;;  %v56_v3 = vld [vmem:[#allocation2 + $0x70] sm:$0xff]  ;;  %v27_v4 = vld [vmem:[%s299_s0 + $0x8] sm:$0xff]  ;;  %v54_v6 = vld [vmem:[#allocation2 + $0x60] sm:$0xff]  ;;  %s265_s0 = smov [#allocation5]  }
  0x10   :  { %31 = vperm.xlu0 %215, %v26_v1   ;;  %175 = vmatpush3.msra.mxu0 %v57_v2  ;;  %v55_v5 = vld [vmem:[#allocation2 + $0x68] sm:$0xff]  ;;  %v53_v7 = vld [vmem:[#allocation2 + $0x58] sm:$0xff]  ;;  %v52_v8 = vld [vmem:[#allocation2 + $0x50] sm:$0xff]  ;;  %v29_v20 = vand.u32 127, %v28_v19  ;;  %s140_s1 = sshll.u32 %s265_s0, 4  ;;  %s141_s1 = int_to_ptr.vmem [resolvable:$true] %s140_s1 }
  0x11   :  { %176 = vmatprep.subr.mxu0 %v56_v3  ;;  %v51_v9 = vld [vmem:[#allocation2 + $0x48] sm:$0xff]  ;;  %v50_v10 = vld [vmem:[#allocation2 + $0x40] sm:$0xff]  ;;  %v49_v11 = vld [vmem:[#allocation2 + $0x38] sm:$0xff]  ;;  %s236_s20 = scalar_lea.vmem %s141_s1, 256  ;;  %p241_p6 = scmp.lt.s32.totalorder %s141_s1, %s141_s1 }
  0x12   :  { %177 = vmatpush3.msra.mxu0 %v56_v3  ;;  %v48_v12 = vld [vmem:[#allocation2 + $0x30] sm:$0xff]  ;;  %v47_v13 = vld [vmem:[#allocation2 + $0x28] sm:$0xff]  ;;  %v46_v14 = vld [vmem:[#allocation2 + $0x20] sm:$0xff]  ;;  %p237_p5 = scmp.ne.s32.totalorder %s141_s1, %s236_s20  ;;  %p242_p7 = scmp.lt.s32.totalorder %s236_s20, %s236_s20 }
  0x13   :  { %178 = vmatprep.subr.mxu0 %v55_v5  ;;  %v45_v15 = vld [vmem:[#allocation2 + $0x18] sm:$0xff]  ;;  %v44_v16 = vld [vmem:[#allocation2 + $0x10] sm:$0xff]  ;;  %v43_v17 = vld [vmem:[#allocation2 + $0x8] sm:$0xff] }
  0x14   :  { %34 = vperm.xlu0 %215, %v27_v4   ;;  %179 = vmatpush3.msra.mxu0 %v55_v5  ;;  %v42_v18 = vld [vmem:[#allocation2] sm:$0xff]  ;;  %p243_p8 = por %p242_p7, %p241_p6 }
  0x15   :  { %180 = vmatprep.subr.mxu0 %v54_v6 }
  0x16   :  { %181 = vmatpush3.msra.mxu0 %v54_v6  ;;  %p244_p9 = pnand %p243_p8, %p237_p5 }
  0x17   :  { %182 = vmatprep.subr.mxu0 %v53_v7 }
  0x18   :  { %183 = vmatpush3.msra.mxu0 %v53_v7 }
  0x19   :  { %184 = vmatprep.subr.mxu0 %v52_v8 }
  0x1a   :  { %185 = vmatpush3.msra.mxu0 %v52_v8 }
  0x1b   :  { %186 = vmatprep.subr.mxu0 %v51_v9 }
  0x1c   :  { %187 = vmatpush3.msra.mxu0 %v51_v9 }
  0x1d   :  { %188 = vmatprep.subr.mxu0 %v50_v10 }
  0x1e   :  { %189 = vmatpush3.msra.mxu0 %v50_v10 }
  0x1f   :  { %190 = vmatprep.subr.mxu0 %v49_v11 }
  0x20   :  { %191 = vmatpush3.msra.mxu0 %v49_v11 }
  0x21   :  { %192 = vmatprep.subr.mxu0 %v48_v12 }
  0x22   :  { %193 = vmatpush3.msra.mxu0 %v48_v12 }
  0x23   :  { %194 = vmatprep.subr.mxu0 %v47_v13 }
  0x24   :  { %195 = vmatpush3.msra.mxu0 %v47_v13 }
  0x25   :  { %196 = vmatprep.subr.mxu0 %v46_v14 }
  0x26   :  { %197 = vmatpush3.msra.mxu0 %v46_v14 }
  0x27   :  { %198 = vmatprep.subr.mxu0 %v45_v15 }
  0x28   :  { %199 = vmatpush3.msra.mxu0 %v45_v15 }
  0x29   :  { %200 = vmatprep.subr.mxu0 %v44_v16 }
  0x2a   :  { %201 = vmatpush3.msra.mxu0 %v44_v16 }
  0x2b   :  { %202 = vmatprep.subr.mxu0 %v43_v17 }
  0x2c   :  { %203 = vmatpush3.msra.mxu0 %v43_v17 }
  0x2d   :  { %204 = vmatprep.subr.mxu0 %v42_v18 }
  0x2e   :  { %205 = vmatpush3.msra.mxu0 %v42_v18 }
  0x8b   :  { %v32_v21 = vpop.permute.xlu0 %31 }
  0x8c   :  { %vm36_vm0 = vcmp.eq.s32.totalorder %v29_v20, %v32_v21 }
  0x8d   :  { %206 = vmatprep.mubr.msk.f32.mxu0 %vm36_vm0, %v264_v22 }
  0x8f   :  { %v35_v23 = vpop.permute.xlu0 %34 }
  0x90   :  { %vm37_vm1 = vcmp.eq.s32.totalorder %v29_v20, %v35_v23 }
  0x91   :  { %207 = vmatmul.mubr.msk.f32.vlgmr.msra.gmra.mxu0 %vm37_vm1, %v264_v22 }
 0x151   :  { %v208_v24 = vpop.f32.mrf.mxu0 }
 0x152   :  { %134 = vst [vmem:[#allocation5 + $0x8] sm:$0xff] %v208_v24 }
 0x153   :  { %v124_v25 = vpop.f32.mrf.mxu0 }
 0x154   :  { %133 = vst [vmem:[#allocation5] sm:$0xff] %v124_v25 }
 0x155   :  { %247 = shalt.err (!%p244_p9)
}
 0x156   :  { %146 = dma.vmem_to_hbm [thread:$0]  %s141_s1, 256, %s301_s2, [#allocation4], %s261_s12, %s261_s12, %s262_s13  }
 0x157   :  { %258 = dma.done.wait [#allocation4], 256  }
 0x158   :  { %259 = vsyncadd [#allocation4], 4294967040 }
 0x159   :  { %150 = vsyncpa [#allocation3], 1 }
 0x15a   :  { %151 = vsyncpa [#allocation4], 1 }

</bundles_post_ra>
